<compile_context>
chip_gen: v7x
topology: tpu7x:2x2x1
jax: 0.10.0
libtpu: 0.0.40
codegen_flags: <defaults>
</compile_context>

<pallas_src>
import functools
import math

import jax
import jax.numpy as jnp
from jax.experimental import pallas as pl
from jax.experimental.pallas import tpu as pltpu


# ----------------------------------------------------------------------------
# Kernel body
# ----------------------------------------------------------------------------
def _add_pe_kernel(x_ref, pe_ref, o_ref, *, scale, compute_dtype):
    # x_ref: (bB, tT, D) in xs.dtype; pe_ref: (tT, D); o_ref: (bB, tT, D).
    # Pure VPU elementwise: scale-and-add in compute_dtype, cast on store.
    x = x_ref[...].astype(compute_dtype)
    pe = pe_ref[...].astype(compute_dtype)[None, :, :]   # broadcast over batch block
    o_ref[...] = (x * jnp.asarray(scale, compute_dtype) + pe).astype(o_ref.dtype)


# ----------------------------------------------------------------------------
# Sinusoidal table (only T rows, stack+reshape instead of strided scatters)
# ----------------------------------------------------------------------------
@functools.lru_cache(maxsize=16)
def _cached_pe(length, d_model, dtype_name):
    position = jnp.arange(length, dtype=jnp.float32)[:, None]                 # [L, 1]
    div_term = jnp.exp(
        jnp.arange(0, d_model, 2, dtype=jnp.float32)
        * -(math.log(10000.0) / d_model)
    )                                                                         # [D/2]
    angles = position * div_term                                              # [L, D/2]
    # Interleave: even dims = sin, odd dims = cos (matches the PyTorch buffer).
    pe = jnp.stack([jnp.sin(angles), jnp.cos(angles)], axis=-1).reshape(length, d_model)
    return pe.astype(jnp.dtype(dtype_name))


def make_sinusoidal_pe(length, d_model, dtype=jnp.float32):
    return _cached_pe(int(length), int(d_model), jnp.dtype(dtype).name)


# ----------------------------------------------------------------------------
# Generation-aware sizing helpers
# ----------------------------------------------------------------------------
def _device_kind():
    try:
        return jax.devices()[0].device_kind.lower()
    except Exception:
        return ""


def _gen_params():
    kind = _device_kind()
    is_v7 = "v7" in kind
    use_bf16_math = ("v6" in kind) or is_v7          # bf16 VALUs on v6e/v7x only
    if is_v7:
        budget = 40 * 1024 * 1024                    # per-step buffers (64 MiB physical)
        vmem_limit = 48 * 1024 * 1024
    else:
        budget = 48 * 1024 * 1024                    # 128 MiB physical on v5e/v6e
        vmem_limit = 64 * 1024 * 1024
    return is_v7, use_bf16_math, budget, vmem_limit


def _pick_tiles(B, T, D, itemsize, pe_itemsize, budget):
    """Pick (batch_block, seq_tile) that fit the VMEM budget."""
    pack = {4: 8, 2: 16, 1: 32}.get(itemsize, 8)     # sublane packing for perf alignment

    def rows_for(bb):
        # 2 arrays (xs, out) x double buffer x bb rows-of-batch + 2 pe buffers.
        per_row = 4 * bb * D * itemsize + 2 * D * pe_itemsize
        return max(pack, budget // per_row)

    bB = min(B, 8)
    max_rows = rows_for(bB)
    while bB > 1 and max_rows < pack:
        bB //= 2
        max_rows = rows_for(bB)

    tT = min(T, max_rows, 2048)
    if tT < T:
        tT = max(pack, (tT // pack) * pack)          # partial tiles must pack-align
    return bB, tT


def _ensure_two_core_work(B, T, bB, tT, pack):
    """On v7x make sure the sharded parallel axes have combined extent >= 2."""
    n_t = pl.cdiv(T, tT)
    n_b = pl.cdiv(B, bB)
    if n_t * n_b >= 2:
        return bB, tT
    if B >= 2:
        return max(1, (B + 1) // 2), tT              # split the batch axis
    if T >= 2 * pack:
        half = max(pack, ((T + 1) // 2 // pack) * pack)
        return bB, half                              # split the sequence axis
    return bB, tT


# ----------------------------------------------------------------------------
# Public wrapper
# ----------------------------------------------------------------------------
def positional_encoding(xs, *, pe_type="add", max_len=5000, scale=True,
                        tile_t=None, tile_b=None):
    """Forward pass of PositionalEncoding (eval mode: dropout is identity).

    Args:
        xs: [B, T, d_model] float array.
    Returns:
        [B, T, d_model] array, same dtype as xs.
    """
    B, T, D = xs.shape
    d_scale = float(math.sqrt(D)) if scale else 1.0

    if pe_type == "none":
        # A standalone kernel for a single scalar multiply only adds launch
        # overhead and blocks XLA fusion; plain jnp is strictly cheaper.
        return (xs * jnp.asarray(d_scale, dtype=xs.dtype)).astype(xs.dtype)

    if pe_type != "add":
        # TODO(synk): '1dconvNL' pe_type (CausalConv1d+LayerNorm+ReLU) not implemented.
        raise NotImplementedError(pe_type)

    if T > max_len:
        raise ValueError(f"sequence length {T} exceeds max_len={max_len}")
    if D % 2 != 0:
        raise ValueError("d_model must be even for sinusoidal positional encoding")

    is_v7, use_bf16_math, budget, vmem_limit = _gen_params()

    itemsize = jnp.dtype(xs.dtype).itemsize
    bf16_path = use_bf16_math and xs.dtype == jnp.bfloat16
    compute_dtype = jnp.bfloat16 if bf16_path else jnp.float32
    pe_dtype = jnp.bfloat16 if bf16_path else jnp.float32
    pe_itemsize = jnp.dtype(pe_dtype).itemsize

    pe = make_sinusoidal_pe(T, D, dtype=pe_dtype)            # [T, D], only T rows

    pack = {4: 8, 2: 16, 1: 32}.get(itemsize, 8)
    bB, tT = _pick_tiles(B, T, D, itemsize, pe_itemsize, budget)
    if tile_t is not None:
        tT = int(tile_t)
    if tile_b is not None:
        bB = int(tile_b)
    if is_v7 and tile_t is None and tile_b is None:
        bB, tT = _ensure_two_core_work(B, T, bB, tT, pack)

    n_t = pl.cdiv(T, tT)
    n_b = pl.cdiv(B, bB)

    kernel = functools.partial(_add_pe_kernel, scale=d_scale,
                               compute_dtype=compute_dtype)
    cost = pl.CostEstimate(
        flops=2 * B * T * D,
        transcendentals=0,
        bytes_accessed=2 * B * T * D * itemsize + T * D * pe_itemsize,
    )

    return pl.pallas_call(
        kernel,
        out_shape=jax.ShapeDtypeStruct((B, T, D), xs.dtype),
        grid_spec=pltpu.PrefetchScalarGridSpec(
            num_scalar_prefetch=0,
            # T-tiles OUTER, batch-blocks INNER: the pe block index is constant
            # across the inner batch loop, so the pe tile stays VMEM-resident.
            grid=(n_t, n_b),
            in_specs=[
                pl.BlockSpec((bB, tT, D), lambda t, b: (b, t, 0)),
                pl.BlockSpec((tT, D), lambda t, b: (t, 0)),
            ],
            out_specs=pl.BlockSpec((bB, tT, D), lambda t, b: (b, t, 0)),
        ),
        compiler_params=pltpu.CompilerParams(
            dimension_semantics=("parallel", "parallel"),
            vmem_limit_bytes=vmem_limit,
        ),
        cost_estimate=cost,
    )(xs, pe)


# ----------------------------------------------------------------------------
# Self-test
# ----------------------------------------------------------------------------
if __name__ == "__main__":
    key = jax.random.PRNGKey(0)

    # Test 1: lane-dense d_model, automatic tile / batch-block selection.
    B, T, D = 2, 64, 128
    xs = jax.random.normal(key, (B, T, D), dtype=jnp.float32)
    out = jax.block_until_ready(
        positional_encoding(xs, pe_type="add", max_len=5000, scale=True))
    ref = xs * math.sqrt(D) + make_sinusoidal_pe(T, D, dtype=jnp.float32)[None, :, :]
    assert out.shape == (B, T, D) and out.dtype == xs.dtype
    assert jnp.allclose(out, ref, atol=1e-5, rtol=1e-5)

    # Test 2: forced small sequence tile + unit batch block -> multi-step grid.
    out_tiled = jax.block_until_ready(
        positional_encoding(xs, pe_type="add", max_len=5000, scale=True,
                            tile_t=16, tile_b=1))
    assert jnp.allclose(out_tiled, ref, atol=1e-5, rtol=1e-5)

    # Test 3: T and B not multiples of their tiles (partial edge blocks),
    # narrow-but-full D.
    B2, T2, D2 = 3, 20, 32
    xs2 = jax.random.normal(jax.random.PRNGKey(1), (B2, T2, D2), dtype=jnp.float32)
    out2 = jax.block_until_ready(
        positional_encoding(xs2, pe_type="add", max_len=64, scale=True,
                            tile_t=8, tile_b=2))
    ref2 = xs2 * math.sqrt(D2) + make_sinusoidal_pe(T2, D2, dtype=jnp.float32)[None, :, :]
    assert jnp.allclose(out2, ref2, atol=1e-5, rtol=1e-5)

    # Test 4: pe_type='none' path (plain XLA scale, no kernel launch).
    out3 = jax.block_until_ready(
        positional_encoding(xs2, pe_type="none", scale=True))
    assert jnp.allclose(out3, xs2 * math.sqrt(D2), atol=1e-5, rtol=1e-5)

    # Test 5: bf16 input smoke test (bf16 math on v6e/v7x, fp32 math elsewhere).
    xs_bf = jax.random.normal(jax.random.PRNGKey(2), (B, T, D),
                              dtype=jnp.float32).astype(jnp.bfloat16)
    out_bf = jax.block_until_ready(
        positional_encoding(xs_bf, pe_type="add", max_len=5000, scale=True))
    ref_bf = (xs_bf.astype(jnp.float32) * math.sqrt(D)
              + make_sinusoidal_pe(T, D, dtype=jnp.float32)[None, :, :])
    assert out_bf.dtype == jnp.bfloat16
    assert jnp.allclose(out_bf.astype(jnp.float32), ref_bf, atol=0.5, rtol=0.05)

    print("KERNEL_OK")
</pallas_src>

<mosaic_0001>
module attributes {stable_mosaic.version = 11 : i64} {
  func.func @_add_pe_kernel(%arg0: i32, %arg1: i32, %arg2: memref<2x64x128xf32, #tpu.memory_space<vmem>>, %arg3: memref<64x128xf32, #tpu.memory_space<vmem>>, %arg4: memref<2x64x128xf32, #tpu.memory_space<vmem>>) attributes {dimension_semantics = [#tpu.dimension_semantics<parallel>, #tpu.dimension_semantics<parallel>], iteration_bounds = array<i64: 1, 1>, scalar_prefetch = 0 : i64, scratch_operands = 0 : i64, tpu.core_type = #tpu.core_type<tc>, window_params = [{transform_indices = @transform_0, window_bounds = array<i64: 2, 64, 128>}, {transform_indices = @transform_1, window_bounds = array<i64: 64, 128>}, {transform_indices = @transform_2, window_bounds = array<i64: 2, 64, 128>}]} {
    %c0 = arith.constant 0 : index
    %c0_0 = arith.constant 0 : index
    %c0_1 = arith.constant 0 : index
    %0 = vector.load %arg2[%c0, %c0_0, %c0_1] : memref<2x64x128xf32, #tpu.memory_space<vmem>>, vector<2x64x128xf32>
    %c0_2 = arith.constant 0 : index
    %c0_3 = arith.constant 0 : index
    %1 = vector.load %arg3[%c0_2, %c0_3] : memref<64x128xf32, #tpu.memory_space<vmem>>, vector<64x128xf32>
    %2 = vector.shape_cast %1 : vector<64x128xf32> to vector<1x64x128xf32>
    %cst = arith.constant 11.3137083 : f32
    %3 = vector.broadcast %cst : f32 to vector<2x64x128xf32>
    %4 = arith.mulf %0, %3 : vector<2x64x128xf32>
    %5 = vector.broadcast %2 : vector<1x64x128xf32> to vector<2x64x128xf32>
    %6 = arith.addf %4, %5 : vector<2x64x128xf32>
    %c0_4 = arith.constant 0 : index
    %c0_5 = arith.constant 0 : index
    %c0_6 = arith.constant 0 : index
    %7 = vector.load %arg4[%c0_4, %c0_5, %c0_6] : memref<2x64x128xf32, #tpu.memory_space<vmem>>, vector<2x64x128xf32>
    tpu.vector_store %arg4[%c0_4, %c0_5, %c0_6], %6 {strides = array<i32>} : memref<2x64x128xf32, #tpu.memory_space<vmem>>, vector<2x64x128xf32>,
    return
  }
  func.func @transform_0(%arg0: i32, %arg1: i32) -> (i32, i32, i32) {
    %c0_i32 = arith.constant 0 : i32
    %c0_i32_0 = arith.constant 0 : i32
    return %arg1, %arg0, %c0_i32 : i32, i32, i32
  }
  func.func @transform_1(%arg0: i32, %arg1: i32) -> (i32, i32) {
    %c0_i32 = arith.constant 0 : i32
    %c0_i32_0 = arith.constant 0 : i32
    return %arg0, %c0_i32 : i32, i32
  }
  func.func @transform_2(%arg0: i32, %arg1: i32) -> (i32, i32, i32) {
    %c0_i32 = arith.constant 0 : i32
    %c0_i32_0 = arith.constant 0 : i32
    return %arg1, %arg0, %c0_i32 : i32, i32, i32
  }
}

</mosaic_0001>

<bundles_post_ra>
// kernel: tpu_custom_call.1
= control target key start
LH: loop header
LB: loop body
LE: loop exit
PB: predicated region body
PF: predicated region fallthrough
CT: control target
= control target key end

     0   :  { %7 = vsyncpa [#allocation3], 0  ;;  %s272_s0 = inlined_call_operand.hbm [shape: f32[2,64,128], index: 0, kind: input, shape index: {}]   ;;  %s273_s1 = inlined_call_operand.hbm [shape: f32[64,128], index: 1, kind: input, shape index: {}]   ;;  %s274_s2 = inlined_call_operand.hbm [shape: f32[2,64,128], index: 2, kind: output, shape index: {}]  }
   0x1   :  { %8 = vsyncpa [#allocation6], 0 }
   0x2   :  { %9 = vsyncpa [#allocation4], 0  ;;  %s207_s9 = smov [#allocation2]   ;;  %s135_s13 = scalar_lea.hbm %s272_s0, 2048 }
   0x3   :  { %s15_s10 = sshll.u32 %s207_s9, 4  ;;  %p136_p0 = scmp.ne.s32.totalorder %s272_s0, %s135_s13  ;;  %s16_s10 = int_to_ptr.vmem [resolvable:$true] %s15_s10 }
   0x4   :  { %p139_p1 = scmp.lt.u32.totalorder %s135_s13, %s272_s0 }
   0x6   :  { %p141_p2 = pnand %p139_p1, %p136_p0 }
   0x8   :  { %144 = shalt.err (!%p141_p2)
}
   0x9   :  { %s145_s18 = scalar_lea.vmem %s16_s10, 2048  ;;  %p150_p4 = scmp.lt.s32.totalorder %s16_s10, %s16_s10 }
   0xa   :  { %p146_p3 = scmp.ne.s32.totalorder %s16_s10, %s145_s18  ;;  %p151_p5 = scmp.lt.s32.totalorder %s145_s18, %s145_s18 }
   0xc   :  { %p152_p6 = por %p151_p5, %p150_p4 }
   0xe   :  { %p153_p7 = pnand %p152_p6, %p146_p3 }
  0x10   :  { %156 = shalt.err (!%p153_p7)
}
  0x11   :  { %s208_s19 = smov 128   ;;  %s209_s20 = smov 8  }
  0x12   :  { %21 = dma.hbm_to_vmem [thread:$0]  %s272_s0, 2048, %s16_s10, [#allocation3], %s208_s19, %s208_s19, %s209_s20  }
  0x13   :  { %s210_s23 = smov [#allocation5]   ;;  %s157_s27 = scalar_lea.hbm %s273_s1, 1024 }
  0x14   :  { %s27_s24 = sshll.u32 %s210_s23, 4  ;;  %p158_p8 = scmp.ne.s32.totalorder %s273_s1, %s157_s27  ;;  %s28_s24 = int_to_ptr.vmem [resolvable:$true] %s27_s24 }
  0x15   :  { %p161_p9 = scmp.lt.u32.totalorder %s157_s27, %s273_s1 }
  0x17   :  { %p163_p10 = pnand %p161_p9, %p158_p8 }
  0x19   :  { %166 = shalt.err (!%p163_p10)
}
  0x1a   :  { %s167_s4 = scalar_lea.vmem %s28_s24, 1024  ;;  %p172_p12 = scmp.lt.s32.totalorder %s28_s24, %s28_s24 }
  0x1b   :  { %p168_p11 = scmp.ne.s32.totalorder %s28_s24, %s167_s4  ;;  %p173_p13 = scmp.lt.s32.totalorder %s167_s4, %s167_s4 }
  0x1d   :  { %p174_p0 = por %p173_p13, %p172_p12 }
  0x1f   :  { %p175_p1 = pnand %p174_p0, %p168_p11 }
  0x21   :  { %178 = shalt.err (!%p175_p1)
}
  0x22   :  { %33 = dma.hbm_to_vmem [thread:$0]  %s273_s1, 1024, %s28_s24, [#allocation6], %s208_s19, %s208_s19, %s209_s20  }
  0x23   :  { %201 = dma.done.wait [#allocation3], 2048  }
  0x24   :  { %202 = vsyncadd [#allocation3], 4294965248 }
  0x25   :  { %203 = dma.done.wait [#allocation6], 1024  }
  0x26   :  { %204 = vsyncadd [#allocation6], 4294966272  ;;  %v40_v0 = vld [vmem:[#allocation2] sm:$0xff]  ;;  %v41_v2 = vld [vmem:[#allocation2 + $0x8] sm:$0xff]  ;;  %s211_s1 = smov [#allocation7]  }
  0x27   :  { %v56_v1 = vld [vmem:[#allocation5] sm:$0xff]  ;;  %v64_v3 = vmul.f32 11.313708, %v40_v0  ;;  %v57_v4 = vld [vmem:[#allocation5 + $0x8] sm:$0xff]  ;;  %v65_v5 = vmul.f32 11.313708, %v41_v2 }
  0x28   :  { %v42_v6 = vld [vmem:[#allocation2 + $0x10] sm:$0xff]  ;;  %v43_v9 = vld [vmem:[#allocation2 + $0x18] sm:$0xff]  ;;  %v44_v14 = vld [vmem:[#allocation2 + $0x20] sm:$0xff]  ;;  %s117_s6 = sshll.u32 %s211_s1, 4  ;;  %s118_s6 = int_to_ptr.vmem [resolvable:$true] %s117_s6 }
  0x29   :  { %v58_v7 = vld [vmem:[#allocation5 + $0x10] sm:$0xff]  ;;  %v66_v8 = vmul.f32 11.313708, %v42_v6  ;;  %v59_v10 = vld [vmem:[#allocation5 + $0x18] sm:$0xff]  ;;  %v80_v11 = vadd.f32 %v64_v3, %v56_v1  ;;  %v81_v12 = vadd.f32 %v65_v5, %v57_v4  ;;  %v67_v13 = vmul.f32 11.313708, %v43_v9  ;;  %p184_p3 = scmp.lt.s32.totalorder %s118_s6, %s118_s6 }
  0x2a   :  { %v60_v15 = vld [vmem:[#allocation5 + $0x20] sm:$0xff]  ;;  %v45_v16 = vld [vmem:[#allocation2 + $0x28] sm:$0xff]  ;;  %v68_v18 = vmul.f32 11.313708, %v44_v14  ;;  %v46_v21 = vld [vmem:[#allocation2 + $0x30] sm:$0xff]  ;;  %s179_s7 = scalar_lea.vmem %s118_s6, 2048 }
  0x2b   :  { %v82_v17 = vadd.f32 %v66_v8, %v58_v7  ;;  %v61_v19 = vld [vmem:[#allocation5 + $0x28] sm:$0xff]  ;;  %v69_v20 = vmul.f32 11.313708, %v45_v16  ;;  %96 = vst [vmem:[#allocation7] sm:$0xff] %v80_v11  ;;  %97 = vst [vmem:[#allocation7 + $0x8] sm:$0xff] %v81_v12  ;;  %v83_v22 = vadd.f32 %v67_v13, %v59_v10  ;;  %v62_v23 = vld [vmem:[#allocation5 + $0x30] sm:$0xff]  ;;  %p180_p2 = scmp.ne.s32.totalorder %s118_s6, %s179_s7  ;;  %p185_p4 = scmp.lt.s32.totalorder %s179_s7, %s179_s7 }
  0x2c   :  { %v70_v24 = vmul.f32 11.313708, %v46_v21  ;;  %v47_v25 = vld [vmem:[#allocation2 + $0x38] sm:$0xff]  ;;  %v84_v27 = vadd.f32 %v68_v18, %v60_v15  ;;  %v48_v30 = vld [vmem:[#allocation2 + $0x40] sm:$0xff]  ;;  %v49_v31 = vld [vmem:[#allocation2 + $0x48] sm:$0xff] }
  0x2d   :  { %v63_v26 = vld [vmem:[#allocation5 + $0x38] sm:$0xff]  ;;  %98 = vst [vmem:[#allocation7 + $0x10] sm:$0xff] %v82_v17  ;;  %v85_v28 = vadd.f32 %v69_v20, %v61_v19  ;;  %v71_v29 = vmul.f32 11.313708, %v47_v25  ;;  %v50_v32 = vld [vmem:[#allocation2 + $0x50] sm:$0xff]  ;;  %99 = vst [vmem:[#allocation7 + $0x18] sm:$0xff] %v83_v22  ;;  %p186_p5 = por %p185_p4, %p184_p3 }
  0x2e   :  { %v86_v33 = vadd.f32 %v70_v24, %v62_v23  ;;  %v72_v34 = vmul.f32 11.313708, %v48_v30  ;;  %v73_v35 = vmul.f32 11.313708, %v49_v31  ;;  %v74_v36 = vmul.f32 11.313708, %v50_v32 }
  0x2f   :  { %100 = vst [vmem:[#allocation7 + $0x20] sm:$0xff] %v84_v27  ;;  %101 = vst [vmem:[#allocation7 + $0x28] sm:$0xff] %v85_v28  ;;  %v87_v37 = vadd.f32 %v71_v29, %v63_v26  ;;  %v51_v38 = vld [vmem:[#allocation2 + $0x58] sm:$0xff]  ;;  %v52_v39 = vld [vmem:[#allocation2 + $0x60] sm:$0xff]  ;;  %p187_p6 = pnand %p186_p5, %p180_p2 }
  0x30   :  { %v53_v40 = vld [vmem:[#allocation2 + $0x68] sm:$0xff]  ;;  %102 = vst [vmem:[#allocation7 + $0x30] sm:$0xff] %v86_v33  ;;  %v88_v41 = vadd.f32 %v72_v34, %v56_v1  ;;  %v89_v42 = vadd.f32 %v73_v35, %v57_v4  ;;  %v90_v43 = vadd.f32 %v74_v36, %v58_v7  ;;  %v75_v44 = vmul.f32 11.313708, %v51_v38  ;;  %v54_v45 = vld [vmem:[#allocation2 + $0x70] sm:$0xff]  ;;  %v55_v46 = vld [vmem:[#allocation2 + $0x78] sm:$0xff] }
  0x31   :  { %103 = vst [vmem:[#allocation7 + $0x38] sm:$0xff] %v87_v37  ;;  %v76_v47 = vmul.f32 11.313708, %v52_v39  ;;  %v77_v48 = vmul.f32 11.313708, %v53_v40 }
  0x32   :  { %v78_v49 = vmul.f32 11.313708, %v54_v45  ;;  %104 = vst [vmem:[#allocation7 + $0x40] sm:$0xff] %v88_v41  ;;  %105 = vst [vmem:[#allocation7 + $0x48] sm:$0xff] %v89_v42  ;;  %v91_v50 = vadd.f32 %v75_v44, %v59_v10  ;;  %v79_v51 = vmul.f32 11.313708, %v55_v46 }
  0x33   :  { %106 = vst [vmem:[#allocation7 + $0x50] sm:$0xff] %v90_v43  ;;  %v92_v52 = vadd.f32 %v76_v47, %v60_v15  ;;  %v93_v53 = vadd.f32 %v77_v48, %v61_v19 }
  0x34   :  { %v94_v54 = vadd.f32 %v78_v49, %v62_v23  ;;  %107 = vst [vmem:[#allocation7 + $0x58] sm:$0xff] %v91_v50  ;;  %v95_v55 = vadd.f32 %v79_v51, %v63_v26 }
  0x35   :  { %108 = vst [vmem:[#allocation7 + $0x60] sm:$0xff] %v92_v52  ;;  %109 = vst [vmem:[#allocation7 + $0x68] sm:$0xff] %v93_v53 }
  0x36   :  { %110 = vst [vmem:[#allocation7 + $0x70] sm:$0xff] %v94_v54  ;;  %111 = vst [vmem:[#allocation7 + $0x78] sm:$0xff] %v95_v55 }
  0x37   :  { %190 = shalt.err (!%p187_p6)
}
  0x38   :  { %s191_s10 = scalar_lea.hbm %s274_s2, 2048 }
  0x39   :  { %p192_p7 = scmp.ne.s32.totalorder %s274_s2, %s191_s10  ;;  %p195_p8 = scmp.lt.u32.totalorder %s191_s10, %s274_s2 }
  0x3b   :  { %p197_p9 = pnand %p195_p8, %p192_p7 }
  0x3d   :  { %200 = shalt.err (!%p197_p9)
}
  0x3e   :  { %123 = dma.vmem_to_hbm [thread:$0]  %s118_s6, 2048, %s274_s2, [#allocation4], %s208_s19, %s208_s19, %s209_s20  }
  0x3f   :  { %205 = dma.done.wait [#allocation4], 2048  }
  0x40   :  { %206 = vsyncadd [#allocation4], 4294965248 }
  0x41   :  { %127 = vsyncpa [#allocation3], 1 }
  0x42   :  { %128 = vsyncpa [#allocation6], 1 }
  0x43   :  { %129 = vsyncpa [#allocation4], 1 }

</bundles_post_ra>
